<compile_context>
chip_gen: v7x
topology: tpu7x:2x2x1
jax: 0.10.0
libtpu: 0.0.40
codegen_flags: <defaults>
</compile_context>

<pallas_src>
import functools

import jax
import jax.numpy as jnp
from jax import lax
from jax.experimental import pallas as pl
from jax.experimental.pallas import tpu as pltpu

_EPS = 1e-5


def _round_up(x, m):
    return (x + m - 1) // m * m


@functools.lru_cache(maxsize=None)
def _vmem_limit_bytes():
    # v5e/v6e have 128 MiB physical VMEM, v7x only 64 MiB.  Give the kernel a
    # generous cap on big-VMEM parts but never more than half of physical so
    # Mosaic keeps headroom for its internal scratch (re-budget for v7x).
    try:
        cap = int(pltpu.get_tpu_info().vmem_capacity_bytes)
        return int(min(cap // 2, 96 * 1024 * 1024))
    except Exception:
        return 32 * 1024 * 1024


def _pick_images_per_step(n, m):
    """Images per grid step: amortize per-step overhead with bigger tiles but
    keep an even number (>= 2) of grid steps so both v7x TensorCores stay busy."""
    nb = 1
    while (n % (nb * 2) == 0) and (n // (nb * 2) >= 2) and (m * nb * 2 <= 4096):
        nb *= 2
    return nb


# ---------------------------------------------------------------------------
# Direct 3x3 / stride-1 conv kernel (no im2col)
# ---------------------------------------------------------------------------
def _make_conv3x3_kernel(wp, nb, mode, relu=True):
    """Fused 3x3 conv + folded-BN bias + shortcut + ReLU.

    x_ref : (nb, (H+3)*wp, Cin)  bf16  -- zero-padded, row-flattened image(s)
    w_ref : (9, Cin, Cout)       bf16  -- BN-scale-folded taps
    b_ref : (1, Cout)            f32
    o_ref : (nb, H*wp, Cout)

    Output row r = h*wp + w; tap (kh, kw) reads input row r + kh*wp + kw, so
    every tap is one contiguous (m, Cin) ref slice and one MXU dot.
    """

    def kernel(*refs):
        if mode == "plain":
            x_ref, w_ref, b_ref, o_ref = refs
        elif mode == "residual":
            x_ref, w_ref, r_ref, b_ref, o_ref = refs
        else:  # "project": fused 1x1 downsample shortcut conv
            x_ref, w_ref, xs_ref, ws_ref, b_ref, o_ref = refs

        m = o_ref.shape[1]
        cout = o_ref.shape[2]
        for j in range(nb):  # static unroll over images in this grid step
            acc = jnp.zeros((m, cout), jnp.float32)
            for kh in range(3):
                for kw in range(3):
                    lhs = x_ref[j, pl.ds(kh * wp + kw, m), :]
                    acc = acc + jnp.dot(lhs, w_ref[kh * 3 + kw],
                                        preferred_element_type=jnp.float32)
            acc = acc + b_ref[...]
            if mode == "residual":
                # Identity skip: full-precision f32 add on the VPU (rides in a
                # slot the MXU work leaves idle) -- no eye-matmul.
                acc = acc + r_ref[j].astype(jnp.float32)
            elif mode == "project":
                # Real 1x1 downsample conv (+ folded BN) as a second MXU dot.
                acc = acc + jnp.dot(xs_ref[j], ws_ref[...],
                                    preferred_element_type=jnp.float32)
            if relu:
                acc = jnp.maximum(acc, 0.0)
            o_ref[j] = acc.astype(o_ref.dtype)

    return kernel


def conv3x3_bn_fused(x_flat, w_taps, bias, *, wp, ho, residual=None,
                     proj_x=None, proj_w=None, relu=True,
                     out_dtype=jnp.bfloat16):
    n, rows, cin = x_flat.shape
    cout = w_taps.shape[-1]
    m = ho * wp
    assert rows >= (ho + 2) * wp + 2, "input not padded enough for tap slices"

    nb = _pick_images_per_step(n, m)
    grid = (n // nb,)

    x_spec = pl.BlockSpec((nb, rows, cin), lambda i: (i, 0, 0))
    w_spec = pl.BlockSpec((9, cin, cout), lambda i: (0, 0, 0))
    b_spec = pl.BlockSpec((1, cout), lambda i: (0, 0))
    o_spec = pl.BlockSpec((nb, m, cout), lambda i: (i, 0, 0))

    flops = 2 * n * m * cin * cout * 9
    in_specs = [x_spec, w_spec]
    args = [x_flat, w_taps]
    if residual is not None:
        mode = "residual"
        in_specs.append(pl.BlockSpec((nb, m, cout), lambda i: (i, 0, 0)))
        args.append(residual)
    elif proj_x is not None:
        mode = "project"
        cin_s = proj_x.shape[-1]
        in_specs += [pl.BlockSpec((nb, m, cin_s), lambda i: (i, 0, 0)),
                     pl.BlockSpec((cin_s, cout), lambda i: (0, 0))]
        args += [proj_x, proj_w]
        flops += 2 * n * m * cin_s * cout
    else:
        mode = "plain"
    in_specs.append(b_spec)
    args.append(bias)

    bytes_accessed = int(sum(int(a.size) * a.dtype.itemsize for a in args)
                         + n * m * cout * jnp.dtype(out_dtype).itemsize)

    return pl.pallas_call(
        _make_conv3x3_kernel(wp, nb, mode, relu),
        out_shape=jax.ShapeDtypeStruct((n, m, cout), out_dtype),
        grid_spec=pltpu.PrefetchScalarGridSpec(
            num_scalar_prefetch=0,
            grid=grid,
            in_specs=in_specs,
            out_specs=o_spec,
        ),
        compiler_params=pltpu.CompilerParams(
            dimension_semantics=("parallel",),
            vmem_limit_bytes=_vmem_limit_bytes(),
        ),
        cost_estimate=pl.CostEstimate(flops=int(flops), transcendentals=0,
                                      bytes_accessed=bytes_accessed),
    )(*args)


# ---------------------------------------------------------------------------
# im2col matmul path -- only used for the stride-2 conv1 of downsample blocks
# ---------------------------------------------------------------------------
def _mm_bias_relu_kernel(p_ref, w_ref, b_ref, o_ref):
    acc = jnp.dot(p_ref[...], w_ref[...], preferred_element_type=jnp.float32)
    o_ref[...] = jnp.maximum(acc + b_ref[...], 0.0).astype(o_ref.dtype)


def matmul_bias_relu(patches, w_mat, bias, *, out_dtype=jnp.bfloat16, tm=512):
    m, k = patches.shape
    cout = w_mat.shape[1]
    tm = min(tm, _round_up(m, 16))
    if pl.cdiv(m, tm) < 2 and m >= 32:      # keep >= 2 steps for the 2 v7x TCs
        tm = max(16, _round_up(pl.cdiv(m, 2), 16))
    grid = (pl.cdiv(m, tm),)

    bytes_accessed = int(int(patches.size) * 2 + int(w_mat.size) * 2
                         + int(bias.size) * 4
                         + m * cout * jnp.dtype(out_dtype).itemsize)

    return pl.pallas_call(
        _mm_bias_relu_kernel,
        out_shape=jax.ShapeDtypeStruct((m, cout), out_dtype),
        grid_spec=pltpu.PrefetchScalarGridSpec(
            num_scalar_prefetch=0,
            grid=grid,
            in_specs=[pl.BlockSpec((tm, k), lambda i: (i, 0)),
                      pl.BlockSpec((k, cout), lambda i: (0, 0)),
                      pl.BlockSpec((1, cout), lambda i: (0, 0))],
            out_specs=pl.BlockSpec((tm, cout), lambda i: (i, 0)),
        ),
        compiler_params=pltpu.CompilerParams(
            dimension_semantics=("parallel",),
            vmem_limit_bytes=_vmem_limit_bytes(),
        ),
        cost_estimate=pl.CostEstimate(flops=int(2 * m * k * cout),
                                      transcendentals=0,
                                      bytes_accessed=bytes_accessed),
    )(patches.astype(jnp.bfloat16), w_mat, bias)


# ---------------------------------------------------------------------------
# JAX glue: layout prep, im2col (stride-2 only), BN folding, parameter init
# ---------------------------------------------------------------------------
def _pad_flat(x_nhwc, wp):
    """Zero-pad for a 3x3/pad-1 conv and flatten (h, w) into rows.
    H gets (1 top, 2 bottom) rows so every in-kernel tap slice stays in bounds;
    W gets (1 left, wp - w - 1 right) so each image row is wp (mult. of 8) wide."""
    n, h, w, c = x_nhwc.shape
    xp = jnp.pad(x_nhwc, ((0, 0), (1, 2), (1, wp - w - 1), (0, 0)))
    return xp.reshape(n, (h + 3) * wp, c)


def _pad_w_flat(x_nhwc, wp):
    """Right-pad W to wp and flatten rows so shortcut operands share the conv
    output's (h * wp + w) row indexing."""
    n, ho, wo, c = x_nhwc.shape
    xp = jnp.pad(x_nhwc, ((0, 0), (0, 0), (0, wp - wo), (0, 0)))
    return xp.reshape(n, ho * wp, c)


def _extract_patches_3x3(x_nhwc, stride):
    """x: (N,H,W,C) -> (N*Ho*Wo, 9*C) patches (pad=1, 3x3), order (kh,kw,cin)."""
    xp = jnp.pad(x_nhwc, ((0, 0), (1, 1), (1, 1), (0, 0)))
    n, hp, wp, c = xp.shape
    ho = (hp - 3) // stride + 1
    wo = (wp - 3) // stride + 1
    cols = []
    for kh in range(3):
        for kw in range(3):
            cols.append(xp[:, kh:kh + stride * ho:stride, kw:kw + stride * wo:stride, :])
    patches = jnp.concatenate(cols, axis=-1)
    return patches.reshape(n * ho * wo, 9 * c), (n, ho, wo)


def _fold_bn(gamma, beta, mean, var):
    scale = gamma / jnp.sqrt(var + _EPS)
    bias = beta - mean * scale
    return scale, bias


def init_basic_block_params(key, in_planes, planes, stride):
    ks = jax.random.split(key, 10)
    p = {
        "w1": 0.1 * jax.random.normal(ks[0], (planes, in_planes, 3, 3), jnp.float32),
        "g1": 0.5 + jax.random.uniform(ks[1], (planes,), jnp.float32),
        "b1": 0.1 * jax.random.normal(ks[2], (planes,), jnp.float32),
        "m1": 0.1 * jax.random.normal(ks[3], (planes,), jnp.float32),
        "v1": 0.5 + jax.random.uniform(ks[4], (planes,), jnp.float32),
        "w2": 0.1 * jax.random.normal(ks[5], (planes, planes, 3, 3), jnp.float32),
        "g2": 0.5 + jax.random.uniform(ks[6], (planes,), jnp.float32),
        "b2": 0.1 * jax.random.normal(ks[7], (planes,), jnp.float32),
        "m2": 0.1 * jax.random.normal(ks[8], (planes,), jnp.float32),
        "v2": 0.5 + jax.random.uniform(ks[9], (planes,), jnp.float32),
    }
    if stride != 1 or in_planes != planes:
        ks2 = jax.random.split(ks[0], 6)
        p.update({
            "ws": 0.1 * jax.random.normal(ks2[1], (planes, in_planes, 1, 1), jnp.float32),
            "gs": 0.5 + jax.random.uniform(ks2[2], (planes,), jnp.float32),
            "bs": 0.1 * jax.random.normal(ks2[3], (planes,), jnp.float32),
            "ms": 0.1 * jax.random.normal(ks2[4], (planes,), jnp.float32),
            "vs": 0.5 + jax.random.uniform(ks2[5], (planes,), jnp.float32),
        })
    return p


def prepare_basic_block_params(params, in_planes, planes, stride):
    """One-time host-side prep: fold BN scale into the conv weights, lay the
    weights out for the kernels and cast to bf16.  Done ONCE, not per forward."""
    s1, b1 = _fold_bn(params["g1"], params["b1"], params["m1"], params["v1"])
    w1 = jnp.transpose(params["w1"], (2, 3, 1, 0)) * s1       # (3,3,Cin,Cout)
    if stride == 1:
        w1 = w1.reshape(9, in_planes, planes)                 # per-tap matrices
    else:
        w1 = w1.reshape(9 * in_planes, planes)                # im2col matrix

    s2, b2 = _fold_bn(params["g2"], params["b2"], params["m2"], params["v2"])
    w2 = (jnp.transpose(params["w2"], (2, 3, 1, 0)) * s2).reshape(9, planes, planes)

    prep = {
        "w1": w1.astype(jnp.bfloat16),
        "b1": b1.reshape(1, planes).astype(jnp.float32),
        "w2": w2.astype(jnp.bfloat16),
    }
    if stride != 1 or in_planes != planes:
        ss, bs = _fold_bn(params["gs"], params["bs"], params["ms"], params["vs"])
        ws = jnp.transpose(params["ws"][:, :, 0, 0], (1, 0)) * ss  # (Cin, Cout)
        prep["proj_w"] = ws.astype(jnp.bfloat16)
        prep["b2"] = (b2 + bs).reshape(1, planes).astype(jnp.float32)
    else:
        prep["proj_w"] = None
        prep["b2"] = b2.reshape(1, planes).astype(jnp.float32)
    return prep


# ---------------------------------------------------------------------------
# BasicBlock forward (Pallas) — NCHW in / NCHW out like the PyTorch module
# ---------------------------------------------------------------------------
def basic_block_pallas(x_nchw, prep, in_planes, planes, stride):
    n, _, h, w = x_nchw.shape
    ho, wo = h // stride, w // stride
    x = jnp.transpose(x_nchw, (0, 2, 3, 1))                    # NHWC, f32

    # ---- conv1 (3x3, stride) + bn1 + relu -----------------------------------
    if stride == 1:
        wp1 = _round_up(w + 2, 8)
        x1 = _pad_flat(x.astype(jnp.bfloat16), wp1)
        h1 = conv3x3_bn_fused(x1, prep["w1"], prep["b1"], wp=wp1, ho=ho,
                              relu=True, out_dtype=jnp.bfloat16)
        h_nhwc = h1.reshape(n, ho, wp1, planes)[:, :, :wo, :]
    else:
        # Downsample blocks only: im2col on the stride-2-sampled input is a
        # 2.25x (not 9x) blow-up, kept for simple/robust lowering.
        patches, _ = _extract_patches_3x3(x.astype(jnp.bfloat16), stride)
        h_flat = matmul_bias_relu(patches, prep["w1"], prep["b1"],
                                  out_dtype=jnp.bfloat16)
        h_nhwc = h_flat.reshape(n, ho, wo, planes)

    # ---- conv2 (3x3, stride 1) + bn2 + shortcut + relu — one fused kernel ---
    wp2 = _round_up(wo + 2, 8)
    h2 = _pad_flat(h_nhwc, wp2)
    if prep["proj_w"] is None:
        # Identity shortcut: fused f32 VPU add (full-precision skip path).
        res = _pad_w_flat(x, wp2)
        out = conv3x3_bn_fused(h2, prep["w2"], prep["b2"], wp=wp2, ho=ho,
                               residual=res, relu=True, out_dtype=jnp.bfloat16)
    else:
        # Downsample shortcut: 1x1 conv (+ folded BN) fused as a second MXU dot.
        xs = _pad_w_flat(x[:, ::stride, ::stride, :].astype(jnp.bfloat16), wp2)
        out = conv3x3_bn_fused(h2, prep["w2"], prep["b2"], wp=wp2, ho=ho,
                               proj_x=xs, proj_w=prep["proj_w"],
                               relu=True, out_dtype=jnp.bfloat16)

    out = out.reshape(n, ho, wp2, planes)[:, :, :wo, :]
    return jnp.transpose(out, (0, 3, 1, 2)).astype(jnp.float32)  # NHWC -> NCHW


# ---------------------------------------------------------------------------
# Pure-JAX f32 reference (lax.conv) for correctness checking
# ---------------------------------------------------------------------------
def basic_block_ref(x_nchw, params, in_planes, planes, stride):
    x = jnp.transpose(x_nchw, (0, 2, 3, 1))
    dn = ("NHWC", "HWIO", "NHWC")

    def conv(inp, w_oihw, strides, pad):
        w = jnp.transpose(w_oihw, (2, 3, 1, 0))
        return lax.conv_general_dilated(inp, w, strides, pad, dimension_numbers=dn)

    def bn(inp, g, b, m, v):
        return (inp - m) / jnp.sqrt(v + _EPS) * g + b

    h = conv(x, params["w1"], (stride, stride), ((1, 1), (1, 1)))
    h = jnp.maximum(bn(h, params["g1"], params["b1"], params["m1"], params["v1"]), 0.0)
    o = conv(h, params["w2"], (1, 1), ((1, 1), (1, 1)))
    o = bn(o, params["g2"], params["b2"], params["m2"], params["v2"])
    if stride != 1 or in_planes != planes:
        sc = conv(x, params["ws"], (stride, stride), ((0, 0), (0, 0)))
        sc = bn(sc, params["gs"], params["bs"], params["ms"], params["vs"])
    else:
        sc = x
    out = jnp.maximum(o + sc, 0.0)
    return jnp.transpose(out, (0, 3, 1, 2))


if __name__ == "__main__":
    key = jax.random.PRNGKey(0)

    configs = [
        (4, 8, 2),   # exercises the fused 1x1-conv (downsample) shortcut path
        (8, 8, 1),   # exercises the identity (f32 VPU add) shortcut path
    ]
    for idx, (in_planes, planes, stride) in enumerate(configs):
        kx, kp = jax.random.split(jax.random.fold_in(key, idx))
        x = jax.random.normal(kx, (2, in_planes, 16, 16), jnp.float32)  # NCHW
        params = init_basic_block_params(kp, in_planes, planes, stride)

        # BN folding / weight layout / bf16 casts done ONCE, outside the step.
        prep = prepare_basic_block_params(params, in_planes, planes, stride)
        fwd = jax.jit(functools.partial(basic_block_pallas,
                                        in_planes=in_planes, planes=planes,
                                        stride=stride))

        out = jax.block_until_ready(fwd(x, prep))
        ref = jax.block_until_ready(
            basic_block_ref(x, params, in_planes, planes, stride))

        ho = 16 // stride
        assert out.shape == ref.shape == (2, planes, ho, ho), out.shape
        # bf16 MXU operands with f32 accumulation vs. the f32 reference:
        # agreement at roughly the 1e-2 level for O(1) activations.
        max_err = float(jnp.max(jnp.abs(out - ref)))
        assert jnp.allclose(out, ref, atol=1e-1, rtol=1e-1), max_err

    print("KERNEL_OK")
</pallas_src>

<mosaic_0001>
module attributes {stable_mosaic.version = 11 : i64} {
  func.func @_mm_bias_relu_kernel(%arg0: i32, %arg1: memref<64x36xbf16, #tpu.memory_space<vmem>>, %arg2: memref<36x8xbf16, #tpu.memory_space<vmem>>, %arg3: memref<1x8xf32, #tpu.memory_space<vmem>>, %arg4: memref<64x8xbf16, #tpu.memory_space<vmem>>) attributes {dimension_semantics = [#tpu.dimension_semantics<parallel>], iteration_bounds = array<i64: 2>, scalar_prefetch = 0 : i64, scratch_operands = 0 : i64, tpu.core_type = #tpu.core_type<tc>, window_params = [{transform_indices = @transform_0, window_bounds = array<i64: 64, 36>}, {pipeline_mode = #tpu.pipeline_mode<synchronous>, transform_indices = @transform_1, window_bounds = array<i64: 36, 8>}, {pipeline_mode = #tpu.pipeline_mode<synchronous>, transform_indices = @transform_2, window_bounds = array<i64: 1, 8>}, {transform_indices = @transform_3, window_bounds = array<i64: 64, 8>}]} {
    %c0 = arith.constant 0 : index
    %c0_0 = arith.constant 0 : index
    %0 = vector.load %arg1[%c0, %c0_0] : memref<64x36xbf16, #tpu.memory_space<vmem>>, vector<64x36xbf16>
    %c0_1 = arith.constant 0 : index
    %c0_2 = arith.constant 0 : index
    %1 = vector.load %arg2[%c0_1, %c0_2] : memref<36x8xbf16, #tpu.memory_space<vmem>>, vector<36x8xbf16>
    %cst = arith.constant dense<0.000000e+00> : vector<64x8xf32>
    %2 = tpu.matmul %0, %1, %cst {dimension_numbers = #tpu.dot_dimension_numbers<[1], [0], [0], [1], [0, 0, 1, 1], [], []>} : vector<64x36xbf16>, vector<36x8xbf16>, vector<64x8xf32> -> vector<64x8xf32>
    %c0_3 = arith.constant 0 : index
    %c0_4 = arith.constant 0 : index
    %3 = vector.load %arg3[%c0_3, %c0_4] : memref<1x8xf32, #tpu.memory_space<vmem>>, vector<1x8xf32>
    %4 = vector.broadcast %3 : vector<1x8xf32> to vector<64x8xf32>
    %5 = arith.addf %2, %4 : vector<64x8xf32>
    %cst_5 = arith.constant 0.000000e+00 : f32
    %6 = vector.broadcast %cst_5 : f32 to vector<64x8xf32>
    %7 = arith.maximumf %5, %6 : vector<64x8xf32>
    %8 = arith.truncf %7 : vector<64x8xf32> to vector<64x8xbf16>
    %c0_6 = arith.constant 0 : index
    %c0_7 = arith.constant 0 : index
    %9 = vector.load %arg4[%c0_6, %c0_7] : memref<64x8xbf16, #tpu.memory_space<vmem>>, vector<64x8xbf16>
    tpu.vector_store %arg4[%c0_6, %c0_7], %8 {strides = array<i32>} : memref<64x8xbf16, #tpu.memory_space<vmem>>, vector<64x8xbf16>,
    return
  }
  func.func @transform_0(%arg0: i32) -> (i32, i32) {
    %c0_i32 = arith.constant 0 : i32
    %c0_i32_0 = arith.constant 0 : i32
    return %arg0, %c0_i32 : i32, i32
  }
  func.func @transform_1(%arg0: i32) -> (i32, i32) {
    %c0_i32 = arith.constant 0 : i32
    %c0_i32_0 = arith.constant 0 : i32
    %c0_i32_1 = arith.constant 0 : i32
    return %c0_i32, %c0_i32_0 : i32, i32
  }
  func.func @transform_2(%arg0: i32) -> (i32, i32) {
    %c0_i32 = arith.constant 0 : i32
    %c0_i32_0 = arith.constant 0 : i32
    %c0_i32_1 = arith.constant 0 : i32
    return %c0_i32, %c0_i32_0 : i32, i32
  }
  func.func @transform_3(%arg0: i32) -> (i32, i32) {
    %c0_i32 = arith.constant 0 : i32
    %c0_i32_0 = arith.constant 0 : i32
    return %arg0, %c0_i32 : i32, i32
  }
}

module attributes {stable_mosaic.version = 11 : i64} {
  func.func @kernel(%arg0: i32, %arg1: memref<1x176x8xbf16, #tpu.memory_space<vmem>>, %arg2: memref<9x8x8xbf16, #tpu.memory_space<vmem>>, %arg3: memref<1x128x4xbf16, #tpu.memory_space<vmem>>, %arg4: memref<4x8xbf16, #tpu.memory_space<vmem>>, %arg5: memref<1x8xf32, #tpu.memory_space<vmem>>, %arg6: memref<1x128x8xbf16, #tpu.memory_space<vmem>>) attributes {dimension_semantics = [#tpu.dimension_semantics<parallel>], iteration_bounds = array<i64: 2>, scalar_prefetch = 0 : i64, scratch_operands = 0 : i64, tpu.core_type = #tpu.core_type<tc>, window_params = [{transform_indices = @transform_0, window_bounds = array<i64: 1, 176, 8>}, {pipeline_mode = #tpu.pipeline_mode<synchronous>, transform_indices = @transform_1, window_bounds = array<i64: 9, 8, 8>}, {transform_indices = @transform_2, window_bounds = array<i64: 1, 128, 4>}, {pipeline_mode = #tpu.pipeline_mode<synchronous>, transform_indices = @transform_3, window_bounds = array<i64: 4, 8>}, {pipeline_mode = #tpu.pipeline_mode<synchronous>, transform_indices = @transform_4, window_bounds = array<i64: 1, 8>}, {transform_indices = @transform_5, window_bounds = array<i64: 1, 128, 8>}]} {
    %cst = arith.constant 0.000000e+00 : f32
    %0 = vector.broadcast %cst : f32 to vector<128x8xf32>
    %c0 = arith.constant 0 : index
    %c0_0 = arith.constant 0 : index
    %c0_1 = arith.constant 0 : index
    %1 = vector.load %arg1[%c0, %c0_0, %c0_1] : memref<1x176x8xbf16, #tpu.memory_space<vmem>>, vector<1x128x8xbf16>
    %2 = vector.shape_cast %1 : vector<1x128x8xbf16> to vector<128x8xbf16>
    %c0_2 = arith.constant 0 : index
    %c0_3 = arith.constant 0 : index
    %c0_4 = arith.constant 0 : index
    %3 = vector.load %arg2[%c0_2, %c0_3, %c0_4] : memref<9x8x8xbf16, #tpu.memory_space<vmem>>, vector<1x8x8xbf16>
    %4 = vector.shape_cast %3 : vector<1x8x8xbf16> to vector<8x8xbf16>
    %cst_5 = arith.constant dense<0.000000e+00> : vector<128x8xf32>
    %5 = tpu.matmul %2, %4, %cst_5 {dimension_numbers = #tpu.dot_dimension_numbers<[1], [0], [0], [1], [0, 0, 1, 1], [], []>} : vector<128x8xbf16>, vector<8x8xbf16>, vector<128x8xf32> -> vector<128x8xf32>
    %6 = arith.addf %0, %5 : vector<128x8xf32>
    %c0_6 = arith.constant 0 : index
    %c1 = arith.constant 1 : index
    %c0_7 = arith.constant 0 : index
    %7 = vector.load %arg1[%c0_6, %c1, %c0_7] : memref<1x176x8xbf16, #tpu.memory_space<vmem>>, vector<1x128x8xbf16>
    %8 = vector.shape_cast %7 : vector<1x128x8xbf16> to vector<128x8xbf16>
    %c1_8 = arith.constant 1 : index
    %c0_9 = arith.constant 0 : index
    %c0_10 = arith.constant 0 : index
    %9 = vector.load %arg2[%c1_8, %c0_9, %c0_10] : memref<9x8x8xbf16, #tpu.memory_space<vmem>>, vector<1x8x8xbf16>
    %10 = vector.shape_cast %9 : vector<1x8x8xbf16> to vector<8x8xbf16>
    %cst_11 = arith.constant dense<0.000000e+00> : vector<128x8xf32>
    %11 = tpu.matmul %8, %10, %cst_11 {dimension_numbers = #tpu.dot_dimension_numbers<[1], [0], [0], [1], [0, 0, 1, 1], [], []>} : vector<128x8xbf16>, vector<8x8xbf16>, vector<128x8xf32> -> vector<128x8xf32>
    %12 = arith.addf %6, %11 : vector<128x8xf32>
    %c0_12 = arith.constant 0 : index
    %c2 = arith.constant 2 : index
    %c0_13 = arith.constant 0 : index
    %13 = vector.load %arg1[%c0_12, %c2, %c0_13] : memref<1x176x8xbf16, #tpu.memory_space<vmem>>, vector<1x128x8xbf16>
    %14 = vector.shape_cast %13 : vector<1x128x8xbf16> to vector<128x8xbf16>
    %c2_14 = arith.constant 2 : index
    %c0_15 = arith.constant 0 : index
    %c0_16 = arith.constant 0 : index
    %15 = vector.load %arg2[%c2_14, %c0_15, %c0_16] : memref<9x8x8xbf16, #tpu.memory_space<vmem>>, vector<1x8x8xbf16>
    %16 = vector.shape_cast %15 : vector<1x8x8xbf16> to vector<8x8xbf16>
    %cst_17 = arith.constant dense<0.000000e+00> : vector<128x8xf32>
    %17 = tpu.matmul %14, %16, %cst_17 {dimension_numbers = #tpu.dot_dimension_numbers<[1], [0], [0], [1], [0, 0, 1, 1], [], []>} : vector<128x8xbf16>, vector<8x8xbf16>, vector<128x8xf32> -> vector<128x8xf32>
    %18 = arith.addf %12, %17 : vector<128x8xf32>
    %c0_18 = arith.constant 0 : index
    %c16 = arith.constant 16 : index
    %c0_19 = arith.constant 0 : index
    %19 = vector.load %arg1[%c0_18, %c16, %c0_19] : memref<1x176x8xbf16, #tpu.memory_space<vmem>>, vector<1x128x8xbf16>
    %20 = vector.shape_cast %19 : vector<1x128x8xbf16> to vector<128x8xbf16>
    %c3 = arith.constant 3 : index
    %c0_20 = arith.constant 0 : index
    %c0_21 = arith.constant 0 : index
    %21 = vector.load %arg2[%c3, %c0_20, %c0_21] : memref<9x8x8xbf16, #tpu.memory_space<vmem>>, vector<1x8x8xbf16>
    %22 = vector.shape_cast %21 : vector<1x8x8xbf16> to vector<8x8xbf16>
    %cst_22 = arith.constant dense<0.000000e+00> : vector<128x8xf32>
    %23 = tpu.matmul %20, %22, %cst_22 {dimension_numbers = #tpu.dot_dimension_numbers<[1], [0], [0], [1], [0, 0, 1, 1], [], []>} : vector<128x8xbf16>, vector<8x8xbf16>, vector<128x8xf32> -> vector<128x8xf32>
    %24 = arith.addf %18, %23 : vector<128x8xf32>
    %c0_23 = arith.constant 0 : index
    %c17 = arith.constant 17 : index
    %c0_24 = arith.constant 0 : index
    %25 = vector.load %arg1[%c0_23, %c17, %c0_24] : memref<1x176x8xbf16, #tpu.memory_space<vmem>>, vector<1x128x8xbf16>
    %26 = vector.shape_cast %25 : vector<1x128x8xbf16> to vector<128x8xbf16>
    %c4 = arith.constant 4 : index
    %c0_25 = arith.constant 0 : index
    %c0_26 = arith.constant 0 : index
    %27 = vector.load %arg2[%c4, %c0_25, %c0_26] : memref<9x8x8xbf16, #tpu.memory_space<vmem>>, vector<1x8x8xbf16>
    %28 = vector.shape_cast %27 : vector<1x8x8xbf16> to vector<8x8xbf16>
    %cst_27 = arith.constant dense<0.000000e+00> : vector<128x8xf32>
    %29 = tpu.matmul %26, %28, %cst_27 {dimension_numbers = #tpu.dot_dimension_numbers<[1], [0], [0], [1], [0, 0, 1, 1], [], []>} : vector<128x8xbf16>, vector<8x8xbf16>, vector<128x8xf32> -> vector<128x8xf32>
    %30 = arith.addf %24, %29 : vector<128x8xf32>
    %c0_28 = arith.constant 0 : index
    %c18 = arith.constant 18 : index
    %c0_29 = arith.constant 0 : index
    %31 = vector.load %arg1[%c0_28, %c18, %c0_29] : memref<1x176x8xbf16, #tpu.memory_space<vmem>>, vector<1x128x8xbf16>
    %32 = vector.shape_cast %31 : vector<1x128x8xbf16> to vector<128x8xbf16>
    %c5 = arith.constant 5 : index
    %c0_30 = arith.constant 0 : index
    %c0_31 = arith.constant 0 : index
    %33 = vector.load %arg2[%c5, %c0_30, %c0_31] : memref<9x8x8xbf16, #tpu.memory_space<vmem>>, vector<1x8x8xbf16>
    %34 = vector.shape_cast %33 : vector<1x8x8xbf16> to vector<8x8xbf16>
    %cst_32 = arith.constant dense<0.000000e+00> : vector<128x8xf32>
    %35 = tpu.matmul %32, %34, %cst_32 {dimension_numbers = #tpu.dot_dimension_numbers<[1], [0], [0], [1], [0, 0, 1, 1], [], []>} : vector<128x8xbf16>, vector<8x8xbf16>, vector<128x8xf32> -> vector<128x8xf32>
    %36 = arith.addf %30, %35 : vector<128x8xf32>
    %c0_33 = arith.constant 0 : index
    %c32 = arith.constant 32 : index
    %c0_34 = arith.constant 0 : index
    %37 = vector.load %arg1[%c0_33, %c32, %c0_34] : memref<1x176x8xbf16, #tpu.memory_space<vmem>>, vector<1x128x8xbf16>
    %38 = vector.shape_cast %37 : vector<1x128x8xbf16> to vector<128x8xbf16>
    %c6 = arith.constant 6 : index
    %c0_35 = arith.constant 0 : index
    %c0_36 = arith.constant 0 : index
    %39 = vector.load %arg2[%c6, %c0_35, %c0_36] : memref<9x8x8xbf16, #tpu.memory_space<vmem>>, vector<1x8x8xbf16>
    %40 = vector.shape_cast %39 : vector<1x8x8xbf16> to vector<8x8xbf16>
    %cst_37 = arith.constant dense<0.000000e+00> : vector<128x8xf32>
    %41 = tpu.matmul %38, %40, %cst_37 {dimension_numbers = #tpu.dot_dimension_numbers<[1], [0], [0], [1], [0, 0, 1, 1], [], []>} : vector<128x8xbf16>, vector<8x8xbf16>, vector<128x8xf32> -> vector<128x8xf32>
    %42 = arith.addf %36, %41 : vector<128x8xf32>
    %c0_38 = arith.constant 0 : index
    %c33 = arith.constant 33 : index
    %c0_39 = arith.constant 0 : index
    %43 = vector.load %arg1[%c0_38, %c33, %c0_39] : memref<1x176x8xbf16, #tpu.memory_space<vmem>>, vector<1x128x8xbf16>
    %44 = vector.shape_cast %43 : vector<1x128x8xbf16> to vector<128x8xbf16>
    %c7 = arith.constant 7 : index
    %c0_40 = arith.constant 0 : index
    %c0_41 = arith.constant 0 : index
    %45 = vector.load %arg2[%c7, %c0_40, %c0_41] : memref<9x8x8xbf16, #tpu.memory_space<vmem>>, vector<1x8x8xbf16>
    %46 = vector.shape_cast %45 : vector<1x8x8xbf16> to vector<8x8xbf16>
    %cst_42 = arith.constant dense<0.000000e+00> : vector<128x8xf32>
    %47 = tpu.matmul %44, %46, %cst_42 {dimension_numbers = #tpu.dot_dimension_numbers<[1], [0], [0], [1], [0, 0, 1, 1], [], []>} : vector<128x8xbf16>, vector<8x8xbf16>, vector<128x8xf32> -> vector<128x8xf32>
    %48 = arith.addf %42, %47 : vector<128x8xf32>
    %c0_43 = arith.constant 0 : index
    %c34 = arith.constant 34 : index
    %c0_44 = arith.constant 0 : index
    %49 = vector.load %arg1[%c0_43, %c34, %c0_44] : memref<1x176x8xbf16, #tpu.memory_space<vmem>>, vector<1x128x8xbf16>
    %50 = vector.shape_cast %49 : vector<1x128x8xbf16> to vector<128x8xbf16>
    %c8 = arith.constant 8 : index
    %c0_45 = arith.constant 0 : index
    %c0_46 = arith.constant 0 : index
    %51 = vector.load %arg2[%c8, %c0_45, %c0_46] : memref<9x8x8xbf16, #tpu.memory_space<vmem>>, vector<1x8x8xbf16>
    %52 = vector.shape_cast %51 : vector<1x8x8xbf16> to vector<8x8xbf16>
    %cst_47 = arith.constant dense<0.000000e+00> : vector<128x8xf32>
    %53 = tpu.matmul %50, %52, %cst_47 {dimension_numbers = #tpu.dot_dimension_numbers<[1], [0], [0], [1], [0, 0, 1, 1], [], []>} : vector<128x8xbf16>, vector<8x8xbf16>, vector<128x8xf32> -> vector<128x8xf32>
    %54 = arith.addf %48, %53 : vector<128x8xf32>
    %c0_48 = arith.constant 0 : index
    %c0_49 = arith.constant 0 : index
    %55 = vector.load %arg5[%c0_48, %c0_49] : memref<1x8xf32, #tpu.memory_space<vmem>>, vector<1x8xf32>
    %56 = vector.broadcast %55 : vector<1x8xf32> to vector<128x8xf32>
    %57 = arith.addf %54, %56 : vector<128x8xf32>
    %c0_50 = arith.constant 0 : index
    %c0_51 = arith.constant 0 : index
    %c0_52 = arith.constant 0 : index
    %58 = vector.load %arg3[%c0_50, %c0_51, %c0_52] : memref<1x128x4xbf16, #tpu.memory_space<vmem>>, vector<1x128x4xbf16>
    %59 = vector.shape_cast %58 : vector<1x128x4xbf16> to vector<128x4xbf16>
    %c0_53 = arith.constant 0 : index
    %c0_54 = arith.constant 0 : index
    %60 = vector.load %arg4[%c0_53, %c0_54] : memref<4x8xbf16, #tpu.memory_space<vmem>>, vector<4x8xbf16>
    %cst_55 = arith.constant dense<0.000000e+00> : vector<128x8xf32>
    %61 = tpu.matmul %59, %60, %cst_55 {dimension_numbers = #tpu.dot_dimension_numbers<[1], [0], [0], [1], [0, 0, 1, 1], [], []>} : vector<128x4xbf16>, vector<4x8xbf16>, vector<128x8xf32> -> vector<128x8xf32>
    %62 = arith.addf %57, %61 : vector<128x8xf32>
    %cst_56 = arith.constant 0.000000e+00 : f32
    %63 = vector.broadcast %cst_56 : f32 to vector<128x8xf32>
    %64 = arith.maximumf %62, %63 : vector<128x8xf32>
    %65 = arith.truncf %64 : vector<128x8xf32> to vector<128x8xbf16>
    %c0_57 = arith.constant 0 : index
    %c0_58 = arith.constant 0 : index
    %c0_59 = arith.constant 0 : index
    %66 = vector.load %arg6[%c0_57, %c0_58, %c0_59] : memref<1x128x8xbf16, #tpu.memory_space<vmem>>, vector<1x128x8xbf16>
    %67 = vector.shape_cast %66 : vector<1x128x8xbf16> to vector<128x8xbf16>
    %68 = vector.shape_cast %65 : vector<128x8xbf16> to vector<1x128x8xbf16>
    tpu.vector_store %arg6[%c0_57, %c0_58, %c0_59], %68 {strides = array<i32>} : memref<1x128x8xbf16, #tpu.memory_space<vmem>>, vector<1x128x8xbf16>,
    return
  }
  func.func @transform_0(%arg0: i32) -> (i32, i32, i32) {
    %c0_i32 = arith.constant 0 : i32
    %c0_i32_0 = arith.constant 0 : i32
    %c0_i32_1 = arith.constant 0 : i32
    return %arg0, %c0_i32, %c0_i32_0 : i32, i32, i32
  }
  func.func @transform_1(%arg0: i32) -> (i32, i32, i32) {
    %c0_i32 = arith.constant 0 : i32
    %c0_i32_0 = arith.constant 0 : i32
    %c0_i32_1 = arith.constant 0 : i32
    %c0_i32_2 = arith.constant 0 : i32
    return %c0_i32, %c0_i32_0, %c0_i32_1 : i32, i32, i32
  }
  func.func @transform_2(%arg0: i32) -> (i32, i32, i32) {
    %c0_i32 = arith.constant 0 : i32
    %c0_i32_0 = arith.constant 0 : i32
    %c0_i32_1 = arith.constant 0 : i32
    return %arg0, %c0_i32, %c0_i32_0 : i32, i32, i32
  }
  func.func @transform_3(%arg0: i32) -> (i32, i32) {
    %c0_i32 = arith.constant 0 : i32
    %c0_i32_0 = arith.constant 0 : i32
    %c0_i32_1 = arith.constant 0 : i32
    return %c0_i32, %c0_i32_0 : i32, i32
  }
  func.func @transform_4(%arg0: i32) -> (i32, i32) {
    %c0_i32 = arith.constant 0 : i32
    %c0_i32_0 = arith.constant 0 : i32
    %c0_i32_1 = arith.constant 0 : i32
    return %c0_i32, %c0_i32_0 : i32, i32
  }
  func.func @transform_5(%arg0: i32) -> (i32, i32, i32) {
    %c0_i32 = arith.constant 0 : i32
    %c0_i32_0 = arith.constant 0 : i32
    %c0_i32_1 = arith.constant 0 : i32
    return %arg0, %c0_i32, %c0_i32_0 : i32, i32, i32
  }
}

</mosaic_0001>

<bundles_post_ra>
// kernel: basic_block_pallas.2
= control target key start
LH: loop header
LB: loop body
LE: loop exit
PB: predicated region body
PF: predicated region fallthrough
CT: control target
= control target key end

     0   :  { %s528_s12 = smov 0   ;;  %s572_s0 = inlined_call_operand.vmem [shape: bf16[128,36], index: 0, kind: input, shape index: {}]   ;;  %s573_s1 = inlined_call_operand.vmem [shape: bf16[36,8], index: 1, kind: input, shape index: {}]   ;;  %s574_s2 = inlined_call_operand.vmem [shape: f32[1,8], index: 2, kind: input, shape index: {}]   ;;  %s575_s3 = inlined_call_operand.vmem [shape: bf16[128,8], index: 3, kind: output, shape index: {}]  }
   0x1 LB: > { %s417_s13 = sadd.s32 4294967295, %s506_s12   ;;  %p421_p0 = scmp.ge.s32.totalorder %s506_s12, 1  ;;  %s506_s12 = sphi %s528_s12, %s13_s12  }
   0x2   : > { %p138_p1 = scmp.lt.s32.totalorder %s506_s12, 3 }
   0x4   : > { %p139_p2 = pnand %p421_p0, %p138_p1 }
   0x5   : > { %v493_v0 = vld [vmem:[%s573_s1] sm:$0xff] (!%p139_p2)   ;;  %v494_v1 = vld [vmem:[%s573_s1 + $0x8] sm:$0xff] (!%p139_p2)   ;;  %s422_s18 = sshll.u32 (!%p139_p2), %s417_s13, 3  ;;  %v495_v2 = vld [vmem:[%s573_s1 + $0x10] ss:$0 sps:$4 sm:$0x33] (!%p139_p2)  }
   0x6   : > { %142 = sbr.rel (%p139_p2) target bundleno = 240 (0xf0), region = 32  ;;  %463 = vmatprep.subr.bf16.mxu0 (!%p139_p2), %v493_v0  ;;  %477 = vmatprep.subr.bf16.mxu1 (!%p139_p2), %v493_v0  ;;  %p163_p3 = scmp.lt.s32.totalorder (!%p139_p2), %s422_s18, 15  ;;  %vm243_vm0 = vcmask (!%p139_p2), 1041408   ;;  %vm230_vm1 = vcmask (!%p139_p2), 293888   ;;  %v426_v8 = vld [vmem:[%s574_s2] ss:$0 sm:$0xff] (!%p139_p2) }
   0x7   : > { %464 = vmatpush3.bf16.msra.mxu0 (!%p139_p2), %v493_v0  ;;  %480 = vmatpush3.bf16.msra.mxu1 (!%p139_p2), %v493_v0  ;;  %v245_v3 = vsel (!%p139_p2), %vm243_vm0, %v495_v2, 0  ;;  %vm352_vm2 = vcmask (!%p139_p2), 60416  }
   0x8   : > { %465 = vmatprep.subr.bf16.mxu0 (!%p139_p2), %v494_v1  ;;  %478 = vmatprep.subr.bf16.mxu1 (!%p139_p2), %v494_v1 }
   0xb   : > { %466 = vmatpush3.bf16.msra.mxu0 (!%p139_p2), %v494_v1  ;;  %481 = vmatpush3.bf16.msra.mxu1 (!%p139_p2), %v494_v1 }
   0xc   : > { %483 = vmatprep.subr.msk.bf16.mxu0 (!%p139_p2), %vm243_vm0, %v495_v2  ;;  %484 = vmatprep.subr.msk.bf16.mxu1 (!%p139_p2), %vm243_vm0, %v495_v2 }
   0xd   : > { %s577_s18 = smov (!%p163_p3, %s422_s18), 15 }
   0xe   : > { %s423_s21 = sshll.u32 %s577_s18, 2 }
   0xf   : > { %s166_s24 = scalar_lea.vmem %s572_s0, %s423_s21  ;;  %468 = vmatpush3.bf16.msra.mxu0 %v245_v3  ;;  %482 = vmatpush3.bf16.msra.mxu1 %v245_v3  ;;  %s172_s29 = scalar_lea.vmem %s575_s3, %s423_s21 }
  0x10   : > { %v496_v4 = vld [vmem:[%s166_s24] sm:$0xff]   ;;  %v497_v5 = vld [vmem:[%s166_s24 + $0x10] sm:$0xff]   ;;  %v498_v6 = vld [vmem:[%s166_s24 + $0x8] sm:$0xff]  }
  0x11   : > { %469 = vmatprep.mubr.msk.bf16.mxu0 %vm230_vm1, %v496_v4  ;;  %v499_v7 = vld [vmem:[%s166_s24 + $0x18] sm:$0xff]   ;;  %473 = vmatprep.mubr.msk.bf16.mxu1 %vm230_vm1, %v497_v5 }
  0x12   : > { %470 = vmatmul.mubr.msk.bf16.vlgmr.msra.gmra.mrb[0].mxu0 %vm230_vm1, %v498_v6  ;;  %474 = vmatmul.mubr.msk.bf16.vlgmr.msra.gmra.mrb[0].mxu1 %vm230_vm1, %v499_v7 }
  0xe5   : > { %v471_v9 = vpop.f32.mrb[0].mxu0  ;;  %v475_v10 = vpop.f32.mrb[0].mxu1 }
  0xe6   : > { %v290_v11 = vadd.f32 %v471_v9, %v426_v8  ;;  %v306_v12 = vadd.f32 %v475_v10, %v426_v8  ;;  %v281_v13 = vpop.f32.mrb[1].mxu0  ;;  %v297_v14 = vpop.f32.mrb[1].mxu1 }
  0xe7   : > { %v282_v15 = vadd.f32 %v426_v8, %v281_v13  ;;  %v298_v16 = vadd.f32 %v426_v8, %v297_v14  ;;  %v472_v17 = vpop.f32.mrb[2].mxu0  ;;  %v476_v18 = vpop.f32.mrb[2].mxu1 }
  0xe8   : > { %v314_v19 = vmax.f32 %v290_v11, 0.0  ;;  %v318_v20 = vmax.f32 %v306_v12, 0.0  ;;  %v293_v21 = vadd.f32 %v472_v17, %v426_v8  ;;  %v309_v22 = vadd.f32 %v476_v18, %v426_v8  ;;  %v284_v23 = vpop.f32.mrb[3].mxu0  ;;  %v300_v24 = vpop.f32.mrb[3].mxu1 }
  0xe9   : > { %v312_v25 = vmax.f32 %v282_v15, 0.0  ;;  %v316_v26 = vmax.f32 %v298_v16, 0.0  ;;  %v285_v27 = vadd.f32 %v426_v8, %v284_v23  ;;  %v301_v28 = vadd.f32 %v426_v8, %v300_v24 }
  0xea   : > { %v450_v29 = vpack.c.bf16 %v314_v19, %v314_v19  ;;  %v454_v30 = vpack.c.bf16 %v318_v20, %v318_v20  ;;  %v315_v31 = vmax.f32 %v293_v21, 0.0  ;;  %v319_v32 = vmax.f32 %v309_v22, 0.0 }
  0xeb   : > { %v448_v33 = vpack.c.bf16 %v312_v25, %v312_v25  ;;  %v452_v34 = vpack.c.bf16 %v316_v26, %v316_v26  ;;  %v313_v35 = vmax.f32 %v285_v27, 0.0  ;;  %v317_v36 = vmax.f32 %v301_v28, 0.0 }
  0xec   : > { %355 = vst.msk [vmem:[%s172_s29 + $0x8] sm:$0xf] %vm352_vm2, %v450_v29  ;;  %359 = vst.msk [vmem:[%s172_s29 + $0x18] sm:$0xf] %vm352_vm2, %v454_v30  ;;  %v451_v37 = vpack.c.bf16 %v315_v31, %v315_v31  ;;  %v455_v38 = vpack.c.bf16 %v319_v32, %v319_v32 }
  0xed   : > { %353 = vst.msk [vmem:[%s172_s29] sm:$0xf] %vm352_vm2, %v448_v33  ;;  %357 = vst.msk [vmem:[%s172_s29 + $0x10] sm:$0xf] %vm352_vm2, %v452_v34  ;;  %v449_v39 = vpack.c.bf16 %v313_v35, %v313_v35  ;;  %v453_v40 = vpack.c.bf16 %v317_v36, %v317_v36 }
  0xee   : > { %356 = vst.msk [vmem:[%s172_s29 + $0xc] sm:$0xf] %vm352_vm2, %v451_v37  ;;  %360 = vst.msk [vmem:[%s172_s29 + $0x1c] sm:$0xf] %vm352_vm2, %v455_v38 }
  0xef   : > { %354 = vst.msk [vmem:[%s172_s29 + $0x4] sm:$0xf] %vm352_vm2, %v449_v39  ;;  %358 = vst.msk [vmem:[%s172_s29 + $0x14] sm:$0xf] %vm352_vm2, %v453_v40 }
  0xf0 PF: > { %s13_s12 = sadd.s32 1, %s506_s12  }
  0xf1   : > { %p10_p4 = scmp.ge.s32.totalorder %s13_s12, 4  }
  0xf3   :  { %12 = sbr.rel (!%p10_p4) target bundleno = 1 (0x1), region = 62 }

// kernel: basic_block_pallas.3
= control target key start
LH: loop header
LB: loop body
LE: loop exit
PB: predicated region body
PF: predicated region fallthrough
CT: control target
= control target key end

     0   :  { %s3162_s18 = smov 0   ;;  %s3729_s0 = inlined_call_operand.vmem [shape: bf16[2,176,8], index: 0, kind: input, shape index: {}]   ;;  %s3730_s1 = inlined_call_operand.vmem [shape: bf16[9,8,8], index: 1, kind: input, shape index: {}]   ;;  %s3731_s2 = inlined_call_operand.vmem [shape: bf16[2,128,4], index: 2, kind: input, shape index: {}]   ;;  %s3732_s3 = inlined_call_operand.vmem [shape: bf16[4,8], index: 3, kind: input, shape index: {}]   ;;  %s3733_s4 = inlined_call_operand.vmem [shape: f32[1,8], index: 4, kind: input, shape index: {}]   ;;  %s3734_s5 = inlined_call_operand.vmem [shape: bf16[2,128,8], index: 5, kind: output, shape index: {}]  }
   0x1 LB: > { %s2432_s19 = sadd.s32 4294967295, %s3130_s18   ;;  %p2436_p0 = scmp.ge.s32.totalorder %s3130_s18, 1  ;;  %s3130_s18 = sphi %s3162_s18, %s15_s18  }
   0x2   : > { %p197_p1 = scmp.lt.s32.totalorder %s3130_s18, 3 }
   0x4   : > { %p198_p2 = pnand %p2436_p0, %p197_p1 }
   0x5   : > { %vm403_vm0 = vcmask (!%p198_p2), 1043456   ;;  %v2513_v0 = vld [vmem:[%s3730_s1 + $0x14] sm:$0xf] (!%p198_p2)  ;;  %v2442_v1 = vld [vmem:[%s3730_s1 + $0x4] sm:$0xf] (!%p198_p2)  ;;  %p230_p3 = scmp.lt.s32.totalorder (!%p198_p2), %s2432_s19, 1 }
   0x6   : > { %201 = sbr.rel (%p198_p2) target bundleno = 406 (0x196), region = 40  ;;  %3056 = vmatprep.subr.msk.bf16.mxu0 (!%p198_p2), %vm403_vm0, %v2513_v0  ;;  %v1300_v2 = vsel (!%p198_p2), %vm403_vm0, %v2513_v0, 0  ;;  %3051 = vmatprep.subr.msk.bf16.mxu1 (!%p198_p2), %vm403_vm0, %v2442_v1  ;;  %v405_v3 = vsel (!%p198_p2), %vm403_vm0, %v2442_v1, 0  ;;  %v262_v4 = vld [vmem:[%s3730_s1] sm:$0xf] (!%p198_p2)  ;;  %vm378_vm1 = vcmask (!%p198_p2), 64512  }
   0x7   : > { %2802 = vmatpush3.bf16.msra.mxu0 (!%p198_p2), %v1300_v2  ;;  %2712 = vmatpush3.bf16.msra.mxu1 (!%p198_p2), %v405_v3  ;;  %v2523_v5 = vld [vmem:[%s3730_s1 + $0x18] sm:$0xf] (!%p198_p2)  ;;  %vm309_vm2 = vsmask.f32 (!%p198_p2), 7424  ;;  %vm626_vm3 = vcmask (!%p198_p2), 1046528   ;;  %v521_v16 = vsel (!%p198_p2), %vm403_vm0, %v262_v4, 0 }
   0x8   : > { %3052 = vmatprep.subr.msk.bf16.mxu1 (!%p198_p2), %vm403_vm0, %v262_v4  ;;  %3057 = vmatprep.subr.msk.bf16.mxu0 (!%p198_p2), %vm403_vm0, %v2523_v5  ;;  %v1498_v17 = vsel (!%p198_p2), %vm403_vm0, %v2523_v5, 0  ;;  %v3226_v24 = vld [vmem:[%s3730_s1 + $0x1c] sm:$0xf] (!%p198_p2)  ;;  %v3277_v56 = vld [vmem:[%s3730_s1 + $0x8] sm:$0xf] (!%p198_p2)  ;;  %vm2151_vm4 = vcmask (!%p198_p2), 1041408  }
   0x9   : > { %vm2126_vm5 = vcmask (!%p198_p2), 31744   ;;  %vm2348_vm6 = vcmask (!%p198_p2), 60416  }
   0xd   : > { %s3736_s19 = smov (!%p230_p3, %s2432_s19), 1 }
   0xe   : > { %s3061_s28 = smul.u32 88, %s3736_s19  ;;  %s2603_s15 = sshll.u32 %s3736_s19, 6 }
   0xf   : > { %s3487_s20 = scalar_lea.vmem %s3731_s2, %s2603_s15  ;;  %s3680_s29 = scalar_lea.vmem %s3734_s5, %s2603_s15 }
  0x10   : > { %s3194_s6 = scalar_lea.vmem %s3729_s0, %s3061_s28 }
  0x11   : > { %v982_v6 = vld [vmem:[%s3194_s6 + $0x8] sm:$0xf]  ;;  %v983_v7 = vld [vmem:[%s3194_s6 + $0xc] sm:$0xf]  ;;  %v3201_v9 = vld [vmem:[%s3194_s6 + $0x10] sm:$0xff]  }
  0x12   : > { %v3198_v8 = vcombine.low %v982_v6, %v983_v7  ;;  %v1252_v10 = vld [vmem:[%s3194_s6 + $0x8] sm:$0xe]  ;;  %v3205_v12 = vld [vmem:[%s3194_s6 + $0x18] sm:$0xff]   ;;  %v1259_v13 = vrot.slane %v3201_v9, 1  ;;  %v246_v14 = vld [vmem:[%s3194_s6] sm:$0xf] }
  0x13   : > { %v2514_v11 = vcombine.low %v1252_v10, %v983_v7  ;;  %v3210_v15 = vld [vmem:[%s3194_s6 + $0x8] sm:$0xff]   ;;  %v1261_v19 = vrot.slane %v3205_v12, 1  ;;  %v3216_v20 = vld [vmem:[%s3194_s6 + $0x4] sm:$0xf]  ;;  %v3231_v27 = vld [vmem:[%s3194_s6 + $0x10] sm:$0xff]  }
  0x14   : > { %v3219_v21 = vcombine.low %v246_v14, %v3216_v20  ;;  %v318_v22 = vshll.u32 %v3210_v15, 16  ;;  %v322_v23 = vshrl.u32 %v3210_v15, 16  ;;  %v628_v28 = vrot.slane %v3210_v15, 1  ;;  %v3238_v32 = vld [vmem:[%s3194_s6 + $0x20] sm:$0xff]   ;;  %v3243_v34 = vld [vmem:[%s3194_s6 + $0x28] sm:$0xff]   ;;  %v3248_v40 = vld [vmem:[%s3194_s6 + $0x18] sm:$0xff]  }
  0x15   : > { %v1258_v18 = vrot.slane %v2514_v11, 1  ;;  %v1262_v26 = vsel %vm626_vm3, %v1259_v13, %v1261_v19  ;;  %v326_v33 = vshll.u32 %v3231_v27, 16  ;;  %v1263_v37 = vrot.slane %v3238_v32, 1  ;;  %v3255_v44 = vld [vmem:[%s3194_s6 + $0x20] sm:$0xff]   ;;  %v3263_v50 = vld [vmem:[%s3194_s6 + $0x30] sm:$0xff]   ;;  %v3269_v54 = vld [vmem:[%s3194_s6 + $0x38] sm:$0xff]  }
  0x16   : > { %v311_v29 = vshrl.u32 %v3219_v21, 16  ;;  %v313_v30 = vshll.u32 %v3219_v21, 16  ;;  %v320_v31 = vrot.slane %v318_v22, 1  ;;  %v1265_v39 = vrot.slane %v3243_v34, 1  ;;  %v3272_v55 = vld [vmem:[%s3194_s6 + $0x28] sm:$0xff]   ;;  %v3294_v3 = vld [vmem:[%s3194_s6 + $0x30] sm:$0xff]  }
  0x17   : > { %v1260_v25 = vsel %vm626_vm3, %v1258_v18, %v1259_v13  ;;  %v328_v38 = vrot.slane %v326_v33, 1  ;;  %v330_v41 = vshrl.u32 %v3231_v27, 16  ;;  %v1264_v43 = vsel %vm626_vm3, %v1261_v19, %v1263_v37  ;;  %v3299_v6 = vld [vmem:[%s3194_s6 + $0x40] sm:$0xff]   ;;  %v3306_v11 = vld [vmem:[%s3194_s6 + $0x38] sm:$0xff]  }
  0x18   : > { %2803 = vmatprep.mubr.msk.bf16.mxu0 %vm378_vm1, %v1260_v25  ;;  %v315_v35 = vrot.slane %v313_v30, 1  ;;  %v324_v36 = vor.u32 %v322_v23, %v320_v31  ;;  %v630_v45 = vrot.slane %v3231_v27, 1  ;;  %v1266_v47 = vsel %vm626_vm3, %v1263_v37, %v1265_v39  ;;  %v3313_v18 = vld [vmem:[%s3194_s6 + $0x48] ss:$0 sps:$4 sm:$0x11]  }
  0x19   : > { %2804 = vmatmul.mubr.msk.bf16.vlgmr.msra.gmra.mrb[0].mxu0 %vm378_vm1, %v1262_v26  ;;  %v332_v48 = vor.u32 %v330_v41, %v328_v38  ;;  %v334_v49 = vshll.u32 %v3248_v40, 16  ;;  %v338_v52 = vshrl.u32 %v3248_v40, 16  ;;  %v342_v53 = vshll.u32 %v3255_v44, 16  ;;  %v3088_v25 = vld [vmem:[%s3194_s6 + $0x40] ss:$0 sps:$4 sm:$0x11]  }
  0x1a   : > { %2820 = vmatpush3.bf16.msra.mxu0 %v1498_v17  ;;  %v316_v42 = vor.u32 %v315_v35, %v311_v29  ;;  %v329_v46 = vsel %vm309_vm2, %v324_v36, %v328_v38  ;;  %2807 = vmatprep.mubr.msk.bf16.mxu0 %vm378_vm1, %v1264_v43  ;;  %v3282_v57 = vsel %vm626_vm3, %v628_v28, %v630_v45  ;;  %v1267_v59 = vrot.slane %v3263_v50, 1 }
  0x1b   : > { %3058 = vmatprep.subr.msk.bf16.mxu0 %vm403_vm0, %v3226_v24  ;;  %v336_v58 = vrot.slane %v334_v49, 1  ;;  %v344_v60 = vrot.slane %v342_v53, 1  ;;  %v346_v61 = vshrl.u32 %v3255_v44, 16  ;;  %v350_v62 = vshll.u32 %v3272_v55, 16 }
  0x1c   : > { %v321_v51 = vsel %vm309_vm2, %v316_v42, %v320_v31  ;;  %v1268_v1 = vsel %vm626_vm3, %v1265_v39, %v1267_v59  ;;  %v1269_v2 = vrot.slane %v3269_v54, 1  ;;  %v358_v7 = vshll.u32 %v3294_v3, 16 }
  0x1d   : > { %2713 = vmatprep.mubr.msk.bf16.mxu1 %vm378_vm1, %v321_v51  ;;  %v337_v63 = vsel %vm309_vm2, %v332_v48, %v336_v58  ;;  %v340_v0 = vor.u32 %v338_v52, %v336_v58  ;;  %v348_v4 = vor.u32 %v346_v61, %v344_v60  ;;  %v352_v5 = vrot.slane %v350_v62, 1  ;;  %v3089_v48 = vld [vmem:[%s3194_s6 + $0x10] sm:$0xff]   ;;  %v620_v61 = vld [vmem:[%s3194_s6] sm:$0xe] }
  0x1e   : > { %2714 = vmatmul.mubr.msk.bf16.vlgmr.msra.gmra.mrb[0].mxu1 %vm378_vm1, %v329_v46  ;;  %v1271_v10 = vrot.slane %v3299_v6, 1  ;;  %v354_v14 = vshrl.u32 %v3272_v55, 16  ;;  %v362_v19 = vshrl.u32 %v3294_v3, 16  ;;  %v366_v22 = vshll.u32 %v3306_v11, 16 }
  0x1f   : > { %2730 = vmatpush3.bf16.msra.mxu1 %v521_v16  ;;  %2717 = vmatprep.mubr.msk.bf16.mxu1 %vm378_vm1, %v337_v63  ;;  %v345_v13 = vsel %vm309_vm2, %v340_v0, %v344_v60  ;;  %v1270_v16 = vsel %vm626_vm3, %v1267_v59, %v1269_v2  ;;  %v353_v17 = vsel %vm309_vm2, %v348_v4, %v352_v5  ;;  %v360_v26 = vrot.slane %v358_v7, 1  ;;  %v3360_v0 = vld [vmem:[%s3194_s6 + $0x28] sm:$0xff]   ;;  %v3090_v4 = vld [vmem:[%s3194_s6 + $0x18] sm:$0xff]   ;;  %v3370_v7 = vld [vmem:[%s3194_s6 + $0x30] sm:$0xff]  }
  0x20   : > { %3053 = vmatprep.subr.msk.bf16.mxu1 %vm403_vm0, %v3277_v56  ;;  %v1272_v23 = vsel %vm626_vm3, %v1269_v2, %v1271_v10  ;;  %v356_v29 = vor.u32 %v354_v14, %v352_v5  ;;  %v632_v30 = vrot.slane %v3248_v40, 1  ;;  %v1273_v31 = vrot.slane %v3313_v18, 1 }
  0x21   : > { %2808 = vmatmul.mubr.msk.bf16.gmra.mrb[4].mxu0 %vm378_vm1, %v1266_v47  ;;  %v364_v33 = vor.u32 %v362_v19, %v360_v26  ;;  %v368_v35 = vrot.slane %v366_v22, 1  ;;  %v634_v37 = vrot.slane %v3255_v44, 1  ;;  %v370_v38 = vshrl.u32 %v3306_v11, 16  ;;  %v3381_v19 = vld [vmem:[%s3194_s6 + $0x38] sm:$0xff]  }
  0x22   : > { %2811 = vmatprep.mubr.msk.bf16.mxu0 %vm378_vm1, %v1268_v1  ;;  %v3326_v36 = vsel %vm626_vm3, %v630_v45, %v632_v30  ;;  %v636_v39 = vrot.slane %v3272_v55, 1  ;;  %v361_v41 = vsel %vm309_vm2, %v356_v29, %v360_v26  ;;  %v374_v42 = vshll.u32 %v3088_v25, 16 }
  0x23   : > { %v3333_v43 = vsel %vm626_vm3, %v632_v30, %v634_v37  ;;  %v638_v46 = vrot.slane %v3294_v3, 1  ;;  %v1274_v47 = vsel %vm626_vm3, %v1271_v10, %v1273_v31  ;;  %v369_v45 = vsel %vm309_vm2, %v364_v33, %v368_v35  ;;  %v3091_v10 = vld [vmem:[%s3194_s6 + $0x20] sm:$0xff]   ;;  %v3404_v33 = vld [vmem:[%s3194_s6 + $0x48] sm:$0xff]  }
  0x24   : > { %v3340_v49 = vsel %vm626_vm3, %v634_v37, %v636_v39  ;;  %v640_v51 = vrot.slane %v3306_v11, 1  ;;  %v642_v53 = vrot.slane %v3088_v25, 1  ;;  %v372_v59 = vor.u32 %v370_v38, %v368_v35  ;;  %v3401_v31 = vld [vmem:[%s3194_s6 + $0x40] sm:$0xff]   ;;  %v1613_v38 = vld [vmem:[%s3194_s6 + $0x10] sm:$0xf] }
  0x25   : > { %v3344_v52 = vsel %vm626_vm3, %v636_v39, %v638_v46  ;;  %v376_v60 = vrot.slane %v374_v42, 1  ;;  %v3356_v62 = vsel %vm403_vm0, %v3277_v56, 0  ;;  %v2469_v63 = vcombine.low %v620_v61, %v3216_v20  ;;  %v3374_v56 = vld [vmem:[%s3194_s6 + $0x18] sm:$0xff]   ;;  %v1614_v39 = vld [vmem:[%s3194_s6 + $0x14] sm:$0xf] }
  0x26   : > { %2718 = vmatmul.mubr.msk.bf16.gmra.mrb[4].mxu1 %vm378_vm1, %v345_v13  ;;  %v3348_v58 = vsel %vm626_vm3, %v638_v46, %v640_v51  ;;  %v3363_v1 = vsel %vm626_vm3, %v640_v51, %v642_v53  ;;  %v1047_v2 = vshll.u32 %v3198_v8, 16  ;;  %v1768_v5 = vsel %vm403_vm0, %v3226_v24, 0  ;;  %v3384_v24 = vld [vmem:[%s3194_s6 + $0x20] sm:$0xff]   ;;  %v1883_v53 = vld [vmem:[%s3194_s6 + $0x10] sm:$0xe] }
  0x27   : > { %2721 = vmatprep.mubr.msk.bf16.mxu1 %vm378_vm1, %v353_v17  ;;  %v627_v13 = vrot.slane %v2469_v63, 1  ;;  %v1699_v20 = vshll.u32 %v3360_v0, 16  ;;  %v1703_v14 = vshrl.u32 %v3360_v0, 16  ;;  %v1707_v17 = vshll.u32 %v3370_v7, 16 }
  0x28   : > { %v1711_v26 = vshrl.u32 %v3370_v7, 16  ;;  %v1715_v30 = vshll.u32 %v3381_v19, 16  ;;  %v1719_v35 = vshrl.u32 %v3381_v19, 16  ;;  %v1890_v37 = vrot.slane %v3374_v56, 1 }
  0x29   : > { %2812 = vmatmul.mubr.msk.bf16.gmra.mrb[8].mxu0 %vm378_vm1, %v1270_v16  ;;  %v377_v16 = vsel %vm309_vm2, %v372_v59, %v376_v60  ;;  %v3389_v22 = vsel %vm626_vm3, %v627_v13, %v628_v28  ;;  %v3396_v25 = vrot.slane %v1699_v20, 1  ;;  %v1709_v29 = vrot.slane %v1707_v17, 1 }
  0x2a   : > { %2815 = vmatprep.mubr.msk.bf16.mxu0 %vm378_vm1, %v1272_v23  ;;  %v3394_v23 = vld [vmem:[%s3730_s1 + $0x20] sm:$0xf]  ;;  %v1717_v42 = vrot.slane %v1715_v30, 1  ;;  %v1723_v46 = vshll.u32 %v3401_v31, 16  ;;  %v1731_v51 = vshll.u32 %v3404_v33, 16  ;;  %v1892_v59 = vrot.slane %v3384_v24, 1 }
  0x2b   : > { %v1705_v28 = vor.u32 %v1703_v14, %v3396_v25  ;;  %v2559_v13 = vcombine.low %v1883_v53, %v1614_v39  ;;  %v2541_v30 = vcombine.low %v1613_v38, %v1614_v39  ;;  %v1900_v38 = vrot.slane %v3401_v31, 1 }
  0x2c   : > { %v1721_v61 = vor.u32 %v1719_v35, %v1717_v42  ;;  %v1725_v63 = vrot.slane %v1723_v46, 1  ;;  %v3433_v20 = vsel %vm626_vm3, %v1890_v37, %v1892_v59 }
  0x2d   : > { %v1678_v53 = vshll.u32 %v2541_v30, 16 }
  0x2e   : > { %2722 = vmatmul.mubr.msk.bf16.gmra.mrb[8].mxu1 %vm378_vm1, %v361_v41  ;;  %v1713_v41 = vor.u32 %v1711_v26, %v1709_v29  ;;  %v3436_v14 = vsel %vm309_vm2, %v1721_v61, %v1725_v63  ;;  %v1894_v26 = vrot.slane %v3360_v0, 1  ;;  %v1898_v0 = vrot.slane %v3381_v19, 1 }
  0x2f   : > { %2725 = vmatprep.mubr.msk.bf16.mxu1 %vm378_vm1, %v369_v45  ;;  %v3106_v45 = vld [vmem:[%s3194_s6 + $0x50] ss:$0 sps:$4 sm:$0x11]   ;;  %v1045_v19 = vshrl.u32 %v3198_v8, 16  ;;  %v1683_v61 = vshll.u32 %v3374_v56, 16 }
  0x30   : > { %v3429_v60 = vsel %vm309_vm2, %v1713_v41, %v1717_v42  ;;  %v1889_v41 = vrot.slane %v2559_v13, 1  ;;  %v1896_v42 = vrot.slane %v3370_v7, 1 }
  0x31   : > { %2816 = vmatmul.mubr.msk.bf16.gmra.mrb[12].mxu0 %vm378_vm1, %v1274_v47  ;;  %v1727_v47 = vshrl.u32 %v3401_v31, 16  ;;  %v3474_v31 = vsel %vm626_vm3, %v1898_v0, %v1900_v38 }
  0x32   : > { %2821 = vmatprep.mubr.msk.bf16.mxu0 %vm378_vm1, %v3089_v48  ;;  %v3420_v48 = vsel %vm309_vm2, %v1705_v28, %v1709_v29  ;;  %v3093_v29 = vld [vmem:[%s3194_s6 + $0x30] sm:$0xff]   ;;  %v3443_v28 = vld [vmem:[%s3730_s1 + $0xc] sm:$0xf]  ;;  %v3461_v7 = vsel %vm626_vm3, %v1889_v41, %v1890_v37  ;;  %v1904_v37 = vrot.slane %v3106_v45, 1  ;;  %v1072_v41 = vshrl.u32 %v3238_v32, 16 }
  0x36   : > { %2726 = vmatmul.mubr.msk.bf16.gmra.mrb[12].mxu1 %vm378_vm1, %v377_v16  ;;  %v1729_v16 = vor.u32 %v1727_v47, %v1725_v63  ;;  %v3451_v47 = vsel %vm626_vm3, %v1892_v59, %v1894_v26  ;;  %v1687_v63 = vshrl.u32 %v3374_v56, 16  ;;  %v1068_v56 = vshll.u32 %v3238_v32, 16 }
  0x37   : > { %2731 = vmatprep.mubr.msk.bf16.mxu1 %vm378_vm1, %v3219_v21  ;;  %v1735_v21 = vshrl.u32 %v3404_v33, 16  ;;  %v1084_v32 = vshll.u32 %v3263_v50, 16 }
  0x39   : > { %2822 = vmatmul.mubr.msk.bf16.vlgmr.msra.gmra.mrb[0].mxu0 %vm378_vm1, %v3090_v4  ;;  %v1739_v4 = vshll.u32 %v3106_v45, 16  ;;  %v1049_v45 = vrot.slane %v1047_v2, 1 }
  0x3a   : > { %2838 = vmatpush3.bf16.msra.mxu0 %v1768_v5  ;;  %2825 = vmatprep.mubr.msk.bf16.mxu0 %vm378_vm1, %v3091_v10  ;;  %v3092_v5 = vld [vmem:[%s3194_s6 + $0x28] sm:$0xff]   ;;  %v1733_v10 = vrot.slane %v1731_v51, 1  ;;  %v3464_v51 = vsel %vm626_vm3, %v1894_v26, %v1896_v42  ;;  %v1680_v26 = vrot.slane %v1678_v53, 1  ;;  %v1695_v53 = vshrl.u32 %v3384_v24, 16 }
  0x3b   : > { %3059 = vmatprep.subr.msk.bf16.mxu0 %vm403_vm0, %v3394_v23  ;;  %v1741_v17 = vrot.slane %v1739_v4, 1  ;;  %v1052_v4 = vshll.u32 %v3201_v9, 16  ;;  %v1050_v13 = vor.u32 %v1049_v45, %v1045_v19  ;;  %v1086_v45 = vrot.slane %v1084_v32, 1 }
  0x3c   : > { %v1737_v35 = vor.u32 %v1735_v21, %v1733_v10  ;;  %v3448_v46 = vsel %vm309_vm2, %v1729_v16, %v1733_v10  ;;  %v1902_v21 = vrot.slane %v3404_v33, 1  ;;  %v1676_v33 = vshrl.u32 %v2541_v30, 16 }
  0x3d   : > { %v1691_v10 = vshll.u32 %v3384_v24, 16  ;;  %v1056_v16 = vshrl.u32 %v3201_v9, 16  ;;  %v1685_v9 = vrot.slane %v1683_v61, 1  ;;  %v1108_v24 = vshll.u32 %v3313_v18, 16 }
  0x3e   : > { %2732 = vmatmul.mubr.msk.bf16.vlgmr.msra.gmra.mrb[0].mxu1 %vm378_vm1, %v3210_v15  ;;  %v3458_v39 = vsel %vm309_vm2, %v1737_v35, %v1741_v17  ;;  %v3471_v15 = vsel %vm626_vm3, %v1896_v42, %v1898_v0  ;;  %v3480_v59 = vsel %vm626_vm3, %v1900_v38, %v1902_v21  ;;  %v1060_v17 = vshll.u32 %v3205_v12, 16 }
  0x3f   : > { %2748 = vmatpush3.bf16.msra.mxu1 %v3356_v62  ;;  %2735 = vmatprep.mubr.msk.bf16.mxu1 %vm378_vm1, %v3231_v27  ;;  %v3094_v62 = vld [vmem:[%s3194_s6 + $0x38] sm:$0xff]   ;;  %v3494_v27 = vsel %vm626_vm3, %v1902_v21, %v1904_v37  ;;  %v1064_v35 = vshrl.u32 %v3205_v12, 16  ;;  %v1076_v12 = vshll.u32 %v3243_v34, 16  ;;  %v1070_v0 = vrot.slane %v1068_v56, 1 }
  0x40   : > { %3054 = vmatprep.subr.msk.bf16.mxu1 %vm403_vm0, %v3443_v28  ;;  %v1062_v30 = vrot.slane %v1060_v17, 1  ;;  %v1080_v38 = vshrl.u32 %v3243_v34, 16  ;;  %v1681_v21 = vor.u32 %v1680_v26, %v1676_v33  ;;  %v1088_v37 = vshrl.u32 %v3263_v50, 16 }
  0x41   : > { %2826 = vmatmul.mubr.msk.bf16.gmra.mrb[4].mxu0 %vm378_vm1, %v3092_v5  ;;  %v3095_v5 = vld [vmem:[%s3194_s6 + $0x40] sm:$0xff]   ;;  %v1078_v19 = vrot.slane %v1076_v12, 1  ;;  %v1074_v61 = vor.u32 %v1072_v41, %v1070_v0  ;;  %v1096_v34 = vshrl.u32 %v3269_v54, 16  ;;  %v1104_v17 = vshrl.u32 %v3299_v6, 16 }
  0x42   : > { %2829 = vmatprep.mubr.msk.bf16.mxu0 %vm378_vm1, %v3093_v29  ;;  %v1054_v29 = vrot.slane %v1052_v4, 1  ;;  %v1066_v42 = vor.u32 %v1064_v35, %v1062_v30  ;;  %v3096_v4 = vld [vmem:[%s3194_s6 + $0x48] sm:$0xff]   ;;  %v1090_v50 = vor.u32 %v1088_v37, %v1086_v45  ;;  %v1686_v26 = vsel %vm309_vm2, %v1681_v21, %v1685_v9 }
  0x43   : > { %v3532_v33 = vsel %vm309_vm2, %v1074_v61, %v1078_v19  ;;  %v1689_v41 = vor.u32 %v1687_v63, %v1685_v9  ;;  %v2085_v63 = vld [vmem:[%s3732_s3] sm:$0x3] }
  0x44   : > { %v3508_v8 = vsel %vm309_vm2, %v1050_v13, %v1054_v29  ;;  %v1058_v2 = vor.u32 %v1056_v16, %v1054_v29  ;;  %v1100_v16 = vshll.u32 %v3299_v6, 16  ;;  %v1693_v6 = vrot.slane %v1691_v10, 1 }
  0x46   : > { %2736 = vmatmul.mubr.msk.bf16.gmra.mrb[4].mxu1 %vm378_vm1, %v3248_v40  ;;  %v3518_v40 = vsel %vm309_vm2, %v1058_v2, %v1062_v30  ;;  %v1102_v35 = vrot.slane %v1100_v16, 1  ;;  %v1110_v2 = vrot.slane %v1108_v24, 1  ;;  %v1694_v12 = vsel %vm309_vm2, %v1689_v41, %v1693_v6 }
  0x47   : > { %2739 = vmatprep.mubr.msk.bf16.mxu1 %vm378_vm1, %v3255_v44  ;;  %v1092_v44 = vshll.u32 %v3269_v54, 16 }
  0x48   : > { %v1106_v56 = vor.u32 %v1104_v17, %v1102_v35 }
  0x49   : > { %2830 = vmatmul.mubr.msk.bf16.gmra.mrb[8].mxu0 %vm378_vm1, %v3094_v62  ;;  %v3526_v62 = vsel %vm309_vm2, %v1066_v42, %v1070_v0  ;;  %v1094_v13 = vrot.slane %v1092_v44, 1  ;;  %v1697_v42 = vor.u32 %v1695_v53, %v1693_v6  ;;  %v1931_v0 = vsel %vm403_vm0, %v3394_v23, 0 }
  0x4a   : > { %2833 = vmatprep.mubr.msk.bf16.mxu0 %vm378_vm1, %v3095_v5  ;;  %v1082_v5 = vor.u32 %v1080_v38, %v1078_v19  ;;  %v867_v23 = vsel %vm403_vm0, %v3443_v28, 0  ;;  %v3119_v28 = vld [vmem:[%s3487_s20 + $0x18] sm:$0xff]  }
  0x4b   : > { %v1098_v30 = vor.u32 %v1096_v34, %v1094_v13  ;;  %v3543_v54 = vsel %vm309_vm2, %v1090_v50, %v1094_v13 }
  0x4c   : > { %v3538_v29 = vsel %vm309_vm2, %v1082_v5, %v1086_v45 }
  0x4d   : > { %v3549_v18 = vsel %vm309_vm2, %v1098_v30, %v1102_v35 }
  0x4e   : > { %2740 = vmatmul.mubr.msk.bf16.gmra.mrb[8].mxu1 %vm378_vm1, %v3272_v55  ;;  %v3553_v55 = vsel %vm309_vm2, %v1106_v56, %v1110_v2 }
  0x4f   : > { %2743 = vmatprep.mubr.msk.bf16.mxu1 %vm378_vm1, %v3294_v3  ;;  %v1702_v3 = vsel %vm309_vm2, %v1697_v42, %v3396_v25  ;;  %v3114_v25 = vld [vmem:[%s3194_s6 + $0x38] sm:$0xff]  }
  0x51   : > { %2834 = vmatmul.mubr.msk.bf16.gmra.mrb[12].mxu0 %vm378_vm1, %v3096_v4 }
  0x52   : > { %2839 = vmatprep.mubr.msk.bf16.mxu0 %vm378_vm1, %v1686_v26 }
  0x56   : > { %2744 = vmatmul.mubr.msk.bf16.gmra.mrb[12].mxu1 %vm378_vm1, %v3306_v11  ;;  %v2495_v11 = vld [vmem:[%s3730_s1 + $0x10] sm:$0xf] }
  0x57   : > { %2749 = vmatprep.mubr.msk.bf16.mxu1 %vm378_vm1, %v3389_v22  ;;  %v3113_v22 = vld [vmem:[%s3194_s6 + $0x30] sm:$0xff]  }
  0x59   : > { %2840 = vmatmul.mubr.msk.bf16.vlgmr.msra.gmra.mrb[0].mxu0 %vm378_vm1, %v1694_v12 }
  0x5a   : > { %2856 = vmatpush3.bf16.msra.mxu0 %v1931_v0  ;;  %2843 = vmatprep.mubr.msk.bf16.mxu0 %vm378_vm1, %v1702_v3 }
  0x5b   : > { %3060 = vmatprep.subr.msk.bf16.mxu0 %vm2151_vm4, %v2085_v63 }
  0x5e   : > { %2750 = vmatmul.mubr.msk.bf16.vlgmr.msra.gmra.mrb[0].mxu1 %vm378_vm1, %v3282_v57  ;;  %v3108_v57 = vld [vmem:[%s3194_s6 + $0x8] sm:$0xff]  }
  0x5f   : > { %2766 = vmatpush3.bf16.msra.mxu1 %v867_v23  ;;  %2753 = vmatprep.mubr.msk.bf16.mxu1 %vm378_vm1, %v3326_v36  ;;  %v2153_v36 = vsel %vm2151_vm4, %v2085_v63, 0 }
  0x60   : > { %3055 = vmatprep.subr.msk.bf16.mxu1 %vm403_vm0, %v2495_v11 }
  0x61   : > { %2844 = vmatmul.mubr.msk.bf16.gmra.mrb[4].mxu0 %vm378_vm1, %v3420_v48  ;;  %v3116_v48 = vld [vmem:[%s3487_s20] sm:$0xff]  }
  0x62   : > { %2847 = vmatprep.mubr.msk.bf16.mxu0 %vm378_vm1, %v3429_v60  ;;  %v3115_v60 = vld [vmem:[%s3194_s6 + $0x40] sm:$0xff]  }
  0x66   : > { %2754 = vmatmul.mubr.msk.bf16.gmra.mrb[4].mxu1 %vm378_vm1, %v3333_v43  ;;  %v3109_v43 = vld [vmem:[%s3194_s6 + $0x10] sm:$0xff]  }
  0x67   : > { %2757 = vmatprep.mubr.msk.bf16.mxu1 %vm378_vm1, %v3340_v49  ;;  %v1137_v49 = vsel %vm403_vm0, %v2495_v11, 0 }
  0x69   : > { %2848 = vmatmul.mubr.msk.bf16.gmra.mrb[8].mxu0 %vm378_vm1, %v3436_v14  ;;  %v3118_v14 = vld [vmem:[%s3487_s20 + $0x10] sm:$0xff]  }
  0x6a   : > { %2851 = vmatprep.mubr.msk.bf16.mxu0 %vm378_vm1, %v3448_v46  ;;  %v3120_v46 = vld [vmem:[%s3487_s20 + $0x20] sm:$0xff]  }
  0x6e   : > { %2758 = vmatmul.mubr.msk.bf16.gmra.mrb[8].mxu1 %vm378_vm1, %v3344_v52  ;;  %v3110_v52 = vld [vmem:[%s3194_s6 + $0x18] sm:$0xff]  }
  0x6f   : > { %2761 = vmatprep.mubr.msk.bf16.mxu1 %vm378_vm1, %v3348_v58  ;;  %v3111_v58 = vld [vmem:[%s3194_s6 + $0x20] sm:$0xff]  }
  0x71   : > { %2852 = vmatmul.mubr.msk.bf16.gmra.mrb[12].mxu0 %vm378_vm1, %v3458_v39  ;;  %v3122_v39 = vld [vmem:[%s3487_s20 + $0x30] sm:$0xff]  }
  0x72   : > { %2857 = vmatprep.mubr.msk.bf16.mxu0 %vm378_vm1, %v3461_v7  ;;  %v3123_v7 = vld [vmem:[%s3487_s20 + $0x38] sm:$0xff]  }
  0x76   : > { %2762 = vmatmul.mubr.msk.bf16.gmra.mrb[12].mxu1 %vm378_vm1, %v3363_v1  ;;  %v3112_v1 = vld [vmem:[%s3194_s6 + $0x28] sm:$0xff]  }
  0x77   : > { %2767 = vmatprep.mubr.msk.bf16.mxu1 %vm378_vm1, %v3108_v57 }
  0x79   : > { %2858 = vmatmul.mubr.msk.bf16.vlgmr.msra.gmra.mrb[0].mxu0 %vm378_vm1, %v3433_v20  ;;  %v3117_v20 = vld [vmem:[%s3487_s20 + $0x8] sm:$0xff]  }
  0x7a   : > { %2874 = vmatpush3.bf16.msra.mxu0 %v2153_v36  ;;  %2861 = vmatprep.mubr.msk.bf16.mxu0 %vm378_vm1, %v3451_v47  ;;  %v3121_v47 = vld [vmem:[%s3487_s20 + $0x28] sm:$0xff]  }
  0x7e   : > { %2768 = vmatmul.mubr.msk.bf16.vlgmr.msra.gmra.mrb[0].mxu1 %vm378_vm1, %v3109_v43 }
  0x7f   : > { %2784 = vmatpush3.bf16.msra.mxu1 %v1137_v49  ;;  %2771 = vmatprep.mubr.msk.bf16.mxu1 %vm378_vm1, %v3110_v52 }
  0x81   : > { %2862 = vmatmul.mubr.msk.bf16.gmra.mrb[4].mxu0 %vm378_vm1, %v3464_v51 }
  0x82   : > { %2865 = vmatprep.mubr.msk.bf16.mxu0 %vm378_vm1, %v3471_v15 }
  0x86   : > { %2772 = vmatmul.mubr.msk.bf16.gmra.mrb[4].mxu1 %vm378_vm1, %v3111_v58 }
  0x87   : > { %2775 = vmatprep.mubr.msk.bf16.mxu1 %vm378_vm1, %v3112_v1 }
  0x89   : > { %2866 = vmatmul.mubr.msk.bf16.gmra.mrb[8].mxu0 %vm378_vm1, %v3474_v31 }
  0x8a   : > { %2869 = vmatprep.mubr.msk.bf16.mxu0 %vm378_vm1, %v3480_v59 }
  0x8e   : > { %2776 = vmatmul.mubr.msk.bf16.gmra.mrb[8].mxu1 %vm378_vm1, %v3113_v22 }
  0x8f   : > { %2779 = vmatprep.mubr.msk.bf16.mxu1 %vm378_vm1, %v3114_v25 }
  0x91   : > { %2870 = vmatmul.mubr.msk.bf16.gmra.mrb[12].mxu0 %vm378_vm1, %v3494_v27  ;;  %v3669_v27 = vld [vmem:[%s3733_s4] ss:$0 sm:$0xff] }
  0x92   : > { %2875 = vmatprep.mubr.msk.bf16.mxu0 %vm2126_vm5, %v3116_v48 }
  0x96   : > { %2780 = vmatmul.mubr.msk.bf16.gmra.mrb[12].mxu1 %vm378_vm1, %v3115_v60 }
  0x97   : > { %2785 = vmatprep.mubr.msk.bf16.mxu1 %vm378_vm1, %v3508_v8 }
  0x99   : > { %2876 = vmatmul.mubr.msk.bf16.vlgmr.msra.gmra.mrb[0].mxu0 %vm2126_vm5, %v3117_v20 }
  0x9a   : > { %2879 = vmatprep.mubr.msk.bf16.mxu0 %vm2126_vm5, %v3118_v14 }
  0x9e   : > { %2786 = vmatmul.mubr.msk.bf16.vlgmr.msra.gmra.mrb[0].mxu1 %vm378_vm1, %v3518_v40 }
  0x9f   : > { %2789 = vmatprep.mubr.msk.bf16.mxu1 %vm378_vm1, %v3526_v62 }
  0xa1   : > { %2880 = vmatmul.mubr.msk.bf16.gmra.mrb[4].mxu0 %vm2126_vm5, %v3119_v28 }
  0xa2   : > { %2883 = vmatprep.mubr.msk.bf16.mxu0 %vm2126_vm5, %v3120_v46 }
  0xa6   : > { %2790 = vmatmul.mubr.msk.bf16.gmra.mrb[4].mxu1 %vm378_vm1, %v3532_v33 }
  0xa7   : > { %2793 = vmatprep.mubr.msk.bf16.mxu1 %vm378_vm1, %v3538_v29 }
  0xa9   : > { %2884 = vmatmul.mubr.msk.bf16.gmra.mrb[8].mxu0 %vm2126_vm5, %v3121_v47 }
  0xaa   : > { %2887 = vmatprep.mubr.msk.bf16.mxu0 %vm2126_vm5, %v3122_v39 }
  0xae   : > { %2794 = vmatmul.mubr.msk.bf16.gmra.mrb[8].mxu1 %vm378_vm1, %v3543_v54 }
  0xaf   : > { %2797 = vmatprep.mubr.msk.bf16.mxu1 %vm378_vm1, %v3549_v18 }
  0xb1   : > { %2888 = vmatmul.mubr.msk.bf16.gmra.mrb[12].mxu0 %vm2126_vm5, %v3123_v7 }
  0xb6   : > { %2798 = vmatmul.mubr.msk.bf16.gmra.mrb[12].mxu1 %vm378_vm1, %v3553_v55 }
 0x16c   : > { %v2877_v51 = vpop.f32.mrb[0].mxu0 }
 0x16d   : > { %v2189_v15 = vpop.f32.mrb[1].mxu0 }
 0x16e   : > { %v2878_v31 = vpop.f32.mrb[2].mxu0 }
 0x16f   : > { %v2192_v59 = vpop.f32.mrb[3].mxu0 }
 0x171   : > { %v2787_v10 = vpop.f32.mrb[0].mxu1 }
 0x172   : > { %v2891_v8 = vadd.f32 %v2787_v10, %v3669_v27  ;;  %v1173_v9 = vpop.f32.mrb[1].mxu1 }
 0x173   : > { %v2893_v38 = vadd.f32 %v3669_v27, %v1173_v9  ;;  %v2788_v32 = vpop.f32.mrb[2].mxu1 }
 0x174   : > { %v2881_v40 = vpop.f32.mrb[4].mxu0  ;;  %v2892_v19 = vadd.f32 %v2891_v8, %v2877_v51  ;;  %v2895_v37 = vadd.f32 %v2788_v32, %v3669_v27  ;;  %v1176_v44 = vpop.f32.mrb[3].mxu1 }
 0x175   : > { %v2205_v21 = vpop.f32.mrb[5].mxu0  ;;  %v2894_v62 = vadd.f32 %v2893_v38, %v2189_v15  ;;  %v2897_v61 = vadd.f32 %v3669_v27, %v1176_v44 }
 0x176   : > { %v2882_v53 = vpop.f32.mrb[6].mxu0  ;;  %v2270_v4 = vmax.f32 %v2892_v19, 0.0  ;;  %v2896_v5 = vadd.f32 %v2895_v37, %v2878_v31 }
 0x177   : > { %v2208_v45 = vpop.f32.mrb[7].mxu0  ;;  %v2268_v13 = vmax.f32 %v2894_v62, 0.0  ;;  %v2898_v34 = vadd.f32 %v2897_v61, %v2192_v59 }
 0x178   : > { %v2607_v16 = vpack.c.bf16 %v2270_v4, %v2270_v4  ;;  %v2271_v33 = vmax.f32 %v2896_v5, 0.0 }
 0x179   : > { %v2605_v50 = vpack.c.bf16 %v2268_v13, %v2268_v13  ;;  %v2269_v17 = vmax.f32 %v2898_v34, 0.0  ;;  %v2791_v24 = vpop.f32.mrb[4].mxu1 }
 0x17a   : > { %2351 = vst.msk [vmem:[%s3680_s29 + $0x8] sm:$0xf] %vm2348_vm6, %v2607_v16  ;;  %v2608_v26 = vpack.c.bf16 %v2271_v33, %v2271_v33  ;;  %v2899_v29 = vadd.f32 %v2791_v24, %v3669_v27  ;;  %v1189_v30 = vpop.f32.mrb[5].mxu1 }
 0x17b   : > { %2349 = vst.msk [vmem:[%s3680_s29] sm:$0xf] %vm2348_vm6, %v2605_v50  ;;  %v2606_v54 = vpack.c.bf16 %v2269_v17, %v2269_v17  ;;  %v2901_v2 = vadd.f32 %v3669_v27, %v1189_v30  ;;  %v2792_v6 = vpop.f32.mrb[6].mxu1 }
 0x17c   : > { %v2885_v35 = vpop.f32.mrb[8].mxu0  ;;  %2352 = vst.msk [vmem:[%s3680_s29 + $0xc] sm:$0xf] %vm2348_vm6, %v2608_v26  ;;  %v2900_v56 = vadd.f32 %v2899_v29, %v2881_v40  ;;  %v2903_v41 = vadd.f32 %v2792_v6, %v3669_v27  ;;  %v1192_v42 = vpop.f32.mrb[7].mxu1 }
 0x17d   : > { %v2221_v18 = vpop.f32.mrb[9].mxu0  ;;  %2350 = vst.msk [vmem:[%s3680_s29 + $0x4] sm:$0xf] %vm2348_vm6, %v2606_v54  ;;  %v2902_v12 = vadd.f32 %v2901_v2, %v2205_v21  ;;  %v2905_v0 = vadd.f32 %v3669_v27, %v1192_v42 }
 0x17e   : > { %v2886_v55 = vpop.f32.mrb[10].mxu0  ;;  %v2274_v63 = vmax.f32 %v2900_v56, 0.0  ;;  %v2904_v23 = vadd.f32 %v2903_v41, %v2882_v53 }
 0x17f   : > { %v2224_v3 = vpop.f32.mrb[11].mxu0  ;;  %v2272_v11 = vmax.f32 %v2902_v12, 0.0  ;;  %v2906_v57 = vadd.f32 %v2905_v0, %v2208_v45 }
 0x180   : > { %v2611_v36 = vpack.c.bf16 %v2274_v63, %v2274_v63  ;;  %v2275_v43 = vmax.f32 %v2904_v23, 0.0 }
 0x181   : > { %v2609_v49 = vpack.c.bf16 %v2272_v11, %v2272_v11  ;;  %v2273_v52 = vmax.f32 %v2906_v57, 0.0  ;;  %v2795_v58 = vpop.f32.mrb[8].mxu1 }
 0x182   : > { %2355 = vst.msk [vmem:[%s3680_s29 + $0x18] sm:$0xf] %vm2348_vm6, %v2611_v36  ;;  %v2612_v1 = vpack.c.bf16 %v2275_v43, %v2275_v43  ;;  %v2907_v22 = vadd.f32 %v2795_v58, %v3669_v27  ;;  %v1205_v25 = vpop.f32.mrb[9].mxu1 }
 0x183   : > { %2353 = vst.msk [vmem:[%s3680_s29 + $0x10] sm:$0xf] %vm2348_vm6, %v2609_v49  ;;  %v2610_v60 = vpack.c.bf16 %v2273_v52, %v2273_v52  ;;  %v2909_v20 = vadd.f32 %v3669_v27, %v1205_v25  ;;  %v2796_v14 = vpop.f32.mrb[10].mxu1 }
 0x184   : > { %v2889_v48 = vpop.f32.mrb[12].mxu0  ;;  %2356 = vst.msk [vmem:[%s3680_s29 + $0x1c] sm:$0xf] %vm2348_vm6, %v2612_v1  ;;  %v2908_v46 = vadd.f32 %v2907_v22, %v2885_v35  ;;  %v2911_v47 = vadd.f32 %v2796_v14, %v3669_v27  ;;  %v1208_v39 = vpop.f32.mrb[11].mxu1 }
 0x185   : > { %v2237_v28 = vpop.f32.mrb[13].mxu0  ;;  %2354 = vst.msk [vmem:[%s3680_s29 + $0x14] sm:$0xf] %vm2348_vm6, %v2610_v60  ;;  %v2910_v51 = vadd.f32 %v2909_v20, %v2221_v18  ;;  %v2913_v15 = vadd.f32 %v3669_v27, %v1208_v39 }
 0x186   : > { %v2890_v7 = vpop.f32.mrb[14].mxu0  ;;  %v2278_v59 = vmax.f32 %v2908_v46, 0.0  ;;  %v2912_v10 = vadd.f32 %v2911_v47, %v2886_v55 }
 0x187   : > { %v2240_v31 = vpop.f32.mrb[15].mxu0  ;;  %v2276_v8 = vmax.f32 %v2910_v51, 0.0  ;;  %v2914_v9 = vadd.f32 %v2913_v15, %v2224_v3 }
 0x188   : > { %v2615_v40 = vpack.c.bf16 %v2278_v59, %v2278_v59  ;;  %v2279_v38 = vmax.f32 %v2912_v10, 0.0 }
 0x189   : > { %v2613_v32 = vpack.c.bf16 %v2276_v8, %v2276_v8  ;;  %v2277_v21 = vmax.f32 %v2914_v9, 0.0  ;;  %v2799_v19 = vpop.f32.mrb[12].mxu1 }
 0x18a   : > { %2359 = vst.msk [vmem:[%s3680_s29 + $0x28] sm:$0xf] %vm2348_vm6, %v2615_v40  ;;  %v2616_v37 = vpack.c.bf16 %v2279_v38, %v2279_v38  ;;  %v2915_v44 = vadd.f32 %v2799_v19, %v3669_v27  ;;  %v1221_v53 = vpop.f32.mrb[13].mxu1 }
 0x18b   : > { %2357 = vst.msk [vmem:[%s3680_s29 + $0x20] sm:$0xf] %vm2348_vm6, %v2613_v32  ;;  %v2614_v62 = vpack.c.bf16 %v2277_v21, %v2277_v21  ;;  %v2917_v61 = vadd.f32 %v3669_v27, %v1221_v53  ;;  %v2800_v45 = vpop.f32.mrb[14].mxu1 }
 0x18c   : > { %2360 = vst.msk [vmem:[%s3680_s29 + $0x2c] sm:$0xf] %vm2348_vm6, %v2616_v37  ;;  %v2916_v4 = vadd.f32 %v2915_v44, %v2889_v48  ;;  %v2919_v5 = vadd.f32 %v2800_v45, %v3669_v27  ;;  %v1224_v13 = vpop.f32.mrb[15].mxu1 }
 0x18d   : > { %2358 = vst.msk [vmem:[%s3680_s29 + $0x24] sm:$0xf] %vm2348_vm6, %v2614_v62  ;;  %v2918_v34 = vadd.f32 %v2917_v61, %v2237_v28  ;;  %v2921_v16 = vadd.f32 %v3669_v27, %v1224_v13 }
 0x18e   : > { %v2282_v33 = vmax.f32 %v2916_v4, 0.0  ;;  %v2920_v50 = vadd.f32 %v2919_v5, %v2890_v7 }
 0x18f   : > { %v2280_v17 = vmax.f32 %v2918_v34, 0.0  ;;  %v2922_v24 = vadd.f32 %v2921_v16, %v2240_v31 }
 0x190   : > { %v2619_v26 = vpack.c.bf16 %v2282_v33, %v2282_v33  ;;  %v2283_v29 = vmax.f32 %v2920_v50, 0.0 }
 0x191   : > { %v2617_v30 = vpack.c.bf16 %v2280_v17, %v2280_v17  ;;  %v2281_v35 = vmax.f32 %v2922_v24, 0.0 }
 0x192   : > { %2363 = vst.msk [vmem:[%s3680_s29 + $0x38] sm:$0xf] %vm2348_vm6, %v2619_v26  ;;  %v2620_v54 = vpack.c.bf16 %v2283_v29, %v2283_v29 }
 0x193   : > { %2361 = vst.msk [vmem:[%s3680_s29 + $0x30] sm:$0xf] %vm2348_vm6, %v2617_v30  ;;  %v2618_v2 = vpack.c.bf16 %v2281_v35, %v2281_v35 }
 0x194   : > { %2364 = vst.msk [vmem:[%s3680_s29 + $0x3c] sm:$0xf] %vm2348_vm6, %v2620_v54 }
 0x195   : > { %2362 = vst.msk [vmem:[%s3680_s29 + $0x34] sm:$0xf] %vm2348_vm6, %v2618_v2 }
 0x196 PF: > { %s15_s18 = sadd.s32 1, %s3130_s18  }
 0x197   : > { %p12_p4 = scmp.ge.s32.totalorder %s15_s18, 4  }
 0x199   :  { %14 = sbr.rel (!%p12_p4) target bundleno = 1 (0x1), region = 81 }

</bundles_post_ra>
